<compile_context>
chip_gen: v6e
topology: v6e:2x2x1
jax: 0.10.0
libtpu: 0.0.40
codegen_flags: <defaults>
</compile_context>

<pallas_src>
import math

import jax
import jax.numpy as jnp
import numpy as np
from jax import lax
from jax.experimental import pallas as pl
from jax.experimental.pallas import tpu as pltpu

_INV_SQRT2 = 0.7071067811865476
_LN_EPS = 1e-5


def _gelu(x):
    # exact (erf) GELU, matching torch.nn.GELU() default
    return 0.5 * x * (1.0 + lax.erf(x * _INV_SQRT2))


def _layernorm(x, gamma, beta):
    mean = jnp.mean(x, axis=-1, keepdims=True)
    xc = x - mean
    var = jnp.mean(xc * xc, axis=-1, keepdims=True)
    return xc * lax.rsqrt(var + _LN_EPS) * gamma + beta


def _round_up(x, m):
    return (x + m - 1) // m * m


# -----------------------------------------------------------------------------
# Kernel
# -----------------------------------------------------------------------------
def actor_kernel(state_ref,   # (tb, input_dim)   f32
                 u_ref,       # (tb, G)           f32 uniforms for sampling
                 w1_ref,      # (input_dim, d_ff) bf16
                 w23_ref,     # (2, d_ff, d_ff)   bf16 (LN1/LN2 affines folded in)
                 bvec_ref,    # (3, d_ff)         f32  [b1, b2', b3']
                 wh_ref,      # (d_ff, 3*G)       bf16 head weight, category-blocked
                 hvec_ref,    # (3, 3*G)          f32  [bh'; gh; beh] (permuted)
                 out_ref):    # (tb, 4*G)         f32  [p0 | p1 | p2 | actions]
    f32 = jnp.float32
    bf16 = jnp.bfloat16

    def hidden_block(h, w, layer):
        b = bvec_ref[pl.ds(layer, 1), :]                       # (1, d_ff)
        h = jnp.dot(h.astype(bf16), w, preferred_element_type=f32) + b
        h = _gelu(h)
        mean = jnp.mean(h, axis=-1, keepdims=True)
        hc = h - mean
        var = jnp.mean(hc * hc, axis=-1, keepdims=True)
        # LN affine is folded into the NEXT layer's weight/bias at pack time.
        return hc * lax.rsqrt(var + _LN_EPS)

    x = state_ref[...].astype(f32)
    x1 = hidden_block(x, w1_ref[...], 0)
    x2 = hidden_block(x1, w23_ref[0], 1)
    x3 = hidden_block(x2, w23_ref[1], 2)

    # Action head: one merged matmul over all 3*G output channels.
    bh = hvec_ref[pl.ds(0, 1), :]
    gh = hvec_ref[pl.ds(1, 1), :]
    beh = hvec_ref[pl.ds(2, 1), :]
    y = jnp.dot(x3.astype(bf16), wh_ref[...], preferred_element_type=f32) + bh

    # Full LayerNorm over output_dim = 3*G channels (permutation-invariant).
    mean = jnp.mean(y, axis=-1, keepdims=True)
    d = y - mean
    var = jnp.mean(d * d, axis=-1, keepdims=True)
    y = d * lax.rsqrt(var + _LN_EPS) * gh + beh

    # Grouped (per-joint) softmax over the 3 categories (static lane slices).
    G = y.shape[-1] // 3
    y0 = y[:, :G]
    y1 = y[:, G:2 * G]
    y2 = y[:, 2 * G:]
    m = jnp.maximum(jnp.maximum(y0, y1), y2)
    e0 = jnp.exp(y0 - m)
    e1 = jnp.exp(y1 - m)
    e2 = jnp.exp(y2 - m)
    inv_den = 1.0 / (e0 + e1 + e2)          # exact: probs must sum to 1
    p0 = e0 * inv_den
    p1 = e1 * inv_den
    p2 = e2 * inv_den

    # In-kernel categorical sampling by inverse CDF (3 categories -> 2 compares).
    u = u_ref[...]
    idx = (u >= p0).astype(f32) + (u >= p0 + p1).astype(f32)   # 0, 1 or 2
    actions = idx - 1.0                                        # {-1, 0, 1}

    out_ref[...] = jnp.concatenate([p0, p1, p2, actions], axis=-1)


# -----------------------------------------------------------------------------
# Parameter init / packing
# -----------------------------------------------------------------------------
def init_params(key, input_dim, dim_feedforward, output_dim):
    """f32 init mimicking PyTorch Linear defaults; LN gamma=1, beta=0.
    Weights stored as (in_features, out_features) (transposed torch layout)."""
    def linear(k, fan_in, fan_out):
        k1, k2 = jax.random.split(k)
        bound = 1.0 / math.sqrt(fan_in)
        w = jax.random.uniform(k1, (fan_in, fan_out), jnp.float32, -bound, bound)
        b = jax.random.uniform(k2, (1, fan_out), jnp.float32, -bound, bound)
        return w, b

    keys = jax.random.split(key, 4)
    p = {}
    p["w1"], p["b1"] = linear(keys[0], input_dim, dim_feedforward)
    p["g1"] = jnp.ones((1, dim_feedforward), jnp.float32)
    p["be1"] = jnp.zeros((1, dim_feedforward), jnp.float32)
    p["w2"], p["b2"] = linear(keys[1], dim_feedforward, dim_feedforward)
    p["g2"] = jnp.ones((1, dim_feedforward), jnp.float32)
    p["be2"] = jnp.zeros((1, dim_feedforward), jnp.float32)
    p["w3"], p["b3"] = linear(keys[2], dim_feedforward, dim_feedforward)
    p["g3"] = jnp.ones((1, dim_feedforward), jnp.float32)
    p["be3"] = jnp.zeros((1, dim_feedforward), jnp.float32)
    p["wh"], p["bh"] = linear(keys[3], dim_feedforward, output_dim)
    p["gh"] = jnp.ones((1, output_dim), jnp.float32)
    p["beh"] = jnp.zeros((1, output_dim), jnp.float32)
    return p


def pack_params(p):
    """One-time packing.

    * LN1/LN2/LN3 affines are folded (exactly, in f32) into the following
      layer's weight/bias:  w' = diag(g) @ w,  b' = b + be @ w.
    * The head weight/bias/gamma/beta columns are permuted so that action
      category c occupies lanes [c*G : (c+1)*G] (original column 3g+c) ->
      one merged head matmul + static slices for the grouped softmax.
    * Matmul weights stored bf16, small vectors stay f32.
    """
    f32, bf16 = jnp.float32, jnp.bfloat16
    d_ff = p["w1"].shape[1]
    out_dim = p["wh"].shape[1]
    G = out_dim // 3

    # Fold LN1 into layer 2
    w2f = p["g1"].reshape(d_ff, 1) * p["w2"]
    b2f = p["b2"] + p["be1"] @ p["w2"]
    # Fold LN2 into layer 3
    w3f = p["g2"].reshape(d_ff, 1) * p["w3"]
    b3f = p["b3"] + p["be2"] @ p["w3"]
    # Fold LN3 into the head
    whf = p["g3"].reshape(d_ff, 1) * p["wh"]
    bhf = p["bh"] + p["be3"] @ p["wh"]

    # Permute head columns: new column c*G + g  <-  original column 3g + c
    perm = np.concatenate([np.arange(c, out_dim, 3) for c in range(3)])
    wh_perm = whf[:, perm]
    bh_perm = bhf[:, perm]
    gh_perm = p["gh"][:, perm]
    beh_perm = p["beh"][:, perm]

    return {
        "w1": p["w1"].astype(bf16),                                   # (in, d_ff)
        "w23": jnp.stack([w2f, w3f]).astype(bf16),                    # (2, d_ff, d_ff)
        "bvec": jnp.concatenate([p["b1"], b2f, b3f], 0).astype(f32),  # (3, d_ff)
        "wh": wh_perm.astype(bf16),                                   # (d_ff, 3G)
        "hvec": jnp.concatenate([bh_perm, gh_perm, beh_perm], 0).astype(f32),  # (3, 3G)
        "G": G,
    }


# -----------------------------------------------------------------------------
# Wrapper
# -----------------------------------------------------------------------------
def quadruped_actor_forward(state, packed, sample_key, deterministic=False,
                            block_b=None):
    """Returns (actions (B,G) in {-1,0,1}, probs (B,G,3)).

    `deterministic` is accepted but unused, matching the reference module
    (its flag never changes behavior: it always samples)."""
    del deterministic
    B, input_dim = state.shape
    G = packed["G"]
    out_w = 4 * G

    # Uniforms for in-kernel inverse-CDF sampling.
    u = jax.random.uniform(sample_key, (B, G), jnp.float32)

    # Batch tiling: multiples of 8 sublanes; large tiles amortize grid overhead.
    if block_b is None:
        tb = 256 if B >= 256 else _round_up(B, 8)
    else:
        tb = _round_up(min(block_b, B), 8)
    tb = max(tb, 8)
    B_pad = _round_up(B, tb)
    if B_pad != B:
        state = jnp.pad(state, ((0, B_pad - B), (0, 0)))
        u = jnp.pad(u, ((0, B_pad - B), (0, 0)))

    const2 = lambda i: (0, 0)
    const3 = lambda i: (0, 0, 0)
    out = pl.pallas_call(
        actor_kernel,
        out_shape=jax.ShapeDtypeStruct((B_pad, out_w), jnp.float32),
        grid=(B_pad // tb,),
        in_specs=[
            pl.BlockSpec((tb, input_dim), lambda i: (i, 0)),        # state tile
            pl.BlockSpec((tb, G), lambda i: (i, 0)),                # uniforms tile
            pl.BlockSpec(packed["w1"].shape, const2),               # resident
            pl.BlockSpec(packed["w23"].shape, const3),              # resident
            pl.BlockSpec(packed["bvec"].shape, const2),             # resident
            pl.BlockSpec(packed["wh"].shape, const2),               # resident
            pl.BlockSpec(packed["hvec"].shape, const2),             # resident
        ],
        out_specs=pl.BlockSpec((tb, out_w), lambda i: (i, 0)),
        compiler_params=pltpu.CompilerParams(
            dimension_semantics=("parallel",)),                     # 2 TCs on v7x
    )(state, u, packed["w1"], packed["w23"], packed["bvec"],
      packed["wh"], packed["hvec"])

    out = out[:B]
    # [p0 | p1 | p2] -> (B, 3, G) -> (B, G, 3)
    probs = out[:, :3 * G].reshape(B, 3, G).transpose(0, 2, 1)
    actions = out[:, 3 * G:]
    return actions, probs


# -----------------------------------------------------------------------------
# Pure-JAX reference (mirrors the PyTorch module) for validation
# -----------------------------------------------------------------------------
def _reference_forward(state, p, matmul_dtype=jnp.float32):
    def mm(a, w):
        return jnp.dot(a.astype(matmul_dtype), w.astype(matmul_dtype),
                       preferred_element_type=jnp.float32)

    def block(h, w, b, g, be):
        h = mm(h, w) + b
        h = _gelu(h)
        return _layernorm(h, g, be)

    x = block(state, p["w1"], p["b1"], p["g1"], p["be1"])
    x = block(x, p["w2"], p["b2"], p["g2"], p["be2"])
    x = block(x, p["w3"], p["b3"], p["g3"], p["be3"])
    lg = mm(x, p["wh"]) + p["bh"]
    lg = _layernorm(lg, p["gh"], p["beh"])
    lg = lg.reshape(state.shape[0], -1, 3)
    return jax.nn.softmax(lg, axis=-1)


if __name__ == "__main__":
    INPUT_DIM = 32
    DIM_FEEDFORWARD = 128
    OUTPUT_DIM = 24          # 8 joints * 3 categories
    BATCH = 32               # small demo batch; exercises a 4-step batch grid

    root = jax.random.PRNGKey(0)
    k_params, k_state, k_sample = jax.random.split(root, 3)

    params = init_params(k_params, INPUT_DIM, DIM_FEEDFORWARD, OUTPUT_DIM)
    packed = pack_params(params)
    state = jax.random.normal(k_state, (BATCH, INPUT_DIM), jnp.float32)

    actions, probs = quadruped_actor_forward(state, packed, k_sample, block_b=8)
    actions, probs = jax.block_until_ready((actions, probs))

    G = OUTPUT_DIM // 3
    assert actions.shape == (BATCH, G)
    assert probs.shape == (BATCH, G, 3)
    assert bool(jnp.all(jnp.isfinite(probs)))
    # exact normalization -> probs sum to 1 within f32 rounding
    assert bool(jnp.allclose(jnp.sum(probs, axis=-1), 1.0, atol=1e-4))
    assert bool(jnp.all((actions == -1.0) | (actions == 0.0) | (actions == 1.0)))

    # Tight check vs a reference using the same bf16 matmul inputs.
    probs_bf16_ref = _reference_forward(state, params, matmul_dtype=jnp.bfloat16)
    err_bf16 = float(jnp.max(jnp.abs(probs - probs_bf16_ref)))
    assert err_bf16 < 3e-3, f"kernel deviates from bf16-matmul reference: {err_bf16}"

    # Loose check vs the full f32 reference (bf16 weight storage tolerance).
    probs_f32_ref = _reference_forward(state, params, matmul_dtype=jnp.float32)
    err_f32 = float(jnp.max(jnp.abs(probs - probs_f32_ref)))
    assert err_f32 < 1e-1, f"probs deviate from f32 reference: {err_f32}"

    print("KERNEL_OK")
</pallas_src>

<mosaic_0001>
module attributes {stable_mosaic.version = 11 : i64} {
  func.func @actor_kernel(%arg0: i32, %arg1: memref<8x32xf32, #tpu.memory_space<vmem>>, %arg2: memref<8x8xf32, #tpu.memory_space<vmem>>, %arg3: memref<32x128xbf16, #tpu.memory_space<vmem>>, %arg4: memref<2x128x128xbf16, #tpu.memory_space<vmem>>, %arg5: memref<3x128xf32, #tpu.memory_space<vmem>>, %arg6: memref<128x24xbf16, #tpu.memory_space<vmem>>, %arg7: memref<3x24xf32, #tpu.memory_space<vmem>>, %arg8: memref<8x32xf32, #tpu.memory_space<vmem>>) attributes {dimension_semantics = [#tpu.dimension_semantics<parallel>], iteration_bounds = array<i64: 4>, scalar_prefetch = 0 : i64, scratch_operands = 0 : i64, tpu.core_type = #tpu.core_type<tc>, window_params = [{transform_indices = @transform_0, window_bounds = array<i64: 8, 32>}, {transform_indices = @transform_1, window_bounds = array<i64: 8, 8>}, {pipeline_mode = #tpu.pipeline_mode<synchronous>, transform_indices = @transform_2, window_bounds = array<i64: 32, 128>}, {pipeline_mode = #tpu.pipeline_mode<synchronous>, transform_indices = @transform_3, window_bounds = array<i64: 2, 128, 128>}, {pipeline_mode = #tpu.pipeline_mode<synchronous>, transform_indices = @transform_4, window_bounds = array<i64: 3, 128>}, {pipeline_mode = #tpu.pipeline_mode<synchronous>, transform_indices = @transform_5, window_bounds = array<i64: 128, 24>}, {pipeline_mode = #tpu.pipeline_mode<synchronous>, transform_indices = @transform_6, window_bounds = array<i64: 3, 24>}, {transform_indices = @transform_7, window_bounds = array<i64: 8, 32>}]} {
    %c0 = arith.constant 0 : index
    %c0_0 = arith.constant 0 : index
    %0 = vector.load %arg1[%c0, %c0_0] : memref<8x32xf32, #tpu.memory_space<vmem>>, vector<8x32xf32>
    %c0_1 = arith.constant 0 : index
    %c0_2 = arith.constant 0 : index
    %1 = vector.load %arg3[%c0_1, %c0_2] : memref<32x128xbf16, #tpu.memory_space<vmem>>, vector<32x128xbf16>
    %c0_3 = arith.constant 0 : index
    %c0_4 = arith.constant 0 : index
    %2 = vector.load %arg5[%c0_3, %c0_4] : memref<3x128xf32, #tpu.memory_space<vmem>>, vector<1x128xf32>
    %3 = arith.truncf %0 : vector<8x32xf32> to vector<8x32xbf16>
    %cst = arith.constant dense<0.000000e+00> : vector<8x128xf32>
    %4 = tpu.matmul %3, %1, %cst {dimension_numbers = #tpu.dot_dimension_numbers<[1], [0], [0], [1], [0, 0, 1, 1], [], []>} : vector<8x32xbf16>, vector<32x128xbf16>, vector<8x128xf32> -> vector<8x128xf32>
    %5 = vector.broadcast %2 : vector<1x128xf32> to vector<8x128xf32>
    %6 = arith.addf %4, %5 : vector<8x128xf32>
    %cst_5 = arith.constant 5.000000e-01 : f32
    %7 = vector.broadcast %cst_5 : f32 to vector<8x128xf32>
    %8 = arith.mulf %7, %6 : vector<8x128xf32>
    %cst_6 = arith.constant 0.707106769 : f32
    %9 = vector.broadcast %cst_6 : f32 to vector<8x128xf32>
    %10 = arith.mulf %6, %9 : vector<8x128xf32>
    %11 = math.erf %10 : vector<8x128xf32>
    %cst_7 = arith.constant 1.000000e+00 : f32
    %12 = vector.broadcast %cst_7 : f32 to vector<8x128xf32>
    %13 = arith.addf %12, %11 : vector<8x128xf32>
    %14 = arith.mulf %8, %13 : vector<8x128xf32>
    %cst_8 = arith.constant dense<0.000000e+00> : vector<8xf32>
    %15 = vector.multi_reduction <add>, %14, %cst_8 [1] : vector<8x128xf32> to vector<8xf32>
    %16 = vector.shape_cast %15 : vector<8xf32> to vector<8x1xf32>
    %cst_9 = arith.constant 1.280000e+02 : f32
    %17 = vector.broadcast %cst_9 : f32 to vector<8x1xf32>
    %18 = arith.divf %16, %17 : vector<8x1xf32>
    %19 = vector.broadcast %18 : vector<8x1xf32> to vector<8x128xf32>
    %20 = arith.subf %14, %19 : vector<8x128xf32>
    %21 = arith.mulf %20, %20 : vector<8x128xf32>
    %cst_10 = arith.constant dense<0.000000e+00> : vector<8xf32>
    %22 = vector.multi_reduction <add>, %21, %cst_10 [1] : vector<8x128xf32> to vector<8xf32>
    %23 = vector.shape_cast %22 : vector<8xf32> to vector<8x1xf32>
    %cst_11 = arith.constant 1.280000e+02 : f32
    %24 = vector.broadcast %cst_11 : f32 to vector<8x1xf32>
    %25 = arith.divf %23, %24 : vector<8x1xf32>
    %cst_12 = arith.constant 9.99999974E-6 : f32
    %26 = vector.broadcast %cst_12 : f32 to vector<8x1xf32>
    %27 = arith.addf %25, %26 : vector<8x1xf32>
    %28 = math.rsqrt %27 : vector<8x1xf32>
    %29 = vector.broadcast %28 : vector<8x1xf32> to vector<8x128xf32>
    %30 = arith.mulf %20, %29 : vector<8x128xf32>
    %c0_13 = arith.constant 0 : index
    %c0_14 = arith.constant 0 : index
    %c0_15 = arith.constant 0 : index
    %31 = vector.load %arg4[%c0_13, %c0_14, %c0_15] : memref<2x128x128xbf16, #tpu.memory_space<vmem>>, vector<1x128x128xbf16>
    %32 = vector.shape_cast %31 : vector<1x128x128xbf16> to vector<128x128xbf16>
    %c1 = arith.constant 1 : index
    %c0_16 = arith.constant 0 : index
    %33 = vector.load %arg5[%c1, %c0_16] : memref<3x128xf32, #tpu.memory_space<vmem>>, vector<1x128xf32>
    %34 = arith.truncf %30 : vector<8x128xf32> to vector<8x128xbf16>
    %cst_17 = arith.constant dense<0.000000e+00> : vector<8x128xf32>
    %35 = tpu.matmul %34, %32, %cst_17 {dimension_numbers = #tpu.dot_dimension_numbers<[1], [0], [0], [1], [0, 0, 1, 1], [], []>} : vector<8x128xbf16>, vector<128x128xbf16>, vector<8x128xf32> -> vector<8x128xf32>
    %36 = vector.broadcast %33 : vector<1x128xf32> to vector<8x128xf32>
    %37 = arith.addf %35, %36 : vector<8x128xf32>
    %cst_18 = arith.constant 5.000000e-01 : f32
    %38 = vector.broadcast %cst_18 : f32 to vector<8x128xf32>
    %39 = arith.mulf %38, %37 : vector<8x128xf32>
    %cst_19 = arith.constant 0.707106769 : f32
    %40 = vector.broadcast %cst_19 : f32 to vector<8x128xf32>
    %41 = arith.mulf %37, %40 : vector<8x128xf32>
    %42 = math.erf %41 : vector<8x128xf32>
    %cst_20 = arith.constant 1.000000e+00 : f32
    %43 = vector.broadcast %cst_20 : f32 to vector<8x128xf32>
    %44 = arith.addf %43, %42 : vector<8x128xf32>
    %45 = arith.mulf %39, %44 : vector<8x128xf32>
    %cst_21 = arith.constant dense<0.000000e+00> : vector<8xf32>
    %46 = vector.multi_reduction <add>, %45, %cst_21 [1] : vector<8x128xf32> to vector<8xf32>
    %47 = vector.shape_cast %46 : vector<8xf32> to vector<8x1xf32>
    %cst_22 = arith.constant 1.280000e+02 : f32
    %48 = vector.broadcast %cst_22 : f32 to vector<8x1xf32>
    %49 = arith.divf %47, %48 : vector<8x1xf32>
    %50 = vector.broadcast %49 : vector<8x1xf32> to vector<8x128xf32>
    %51 = arith.subf %45, %50 : vector<8x128xf32>
    %52 = arith.mulf %51, %51 : vector<8x128xf32>
    %cst_23 = arith.constant dense<0.000000e+00> : vector<8xf32>
    %53 = vector.multi_reduction <add>, %52, %cst_23 [1] : vector<8x128xf32> to vector<8xf32>
    %54 = vector.shape_cast %53 : vector<8xf32> to vector<8x1xf32>
    %cst_24 = arith.constant 1.280000e+02 : f32
    %55 = vector.broadcast %cst_24 : f32 to vector<8x1xf32>
    %56 = arith.divf %54, %55 : vector<8x1xf32>
    %cst_25 = arith.constant 9.99999974E-6 : f32
    %57 = vector.broadcast %cst_25 : f32 to vector<8x1xf32>
    %58 = arith.addf %56, %57 : vector<8x1xf32>
    %59 = math.rsqrt %58 : vector<8x1xf32>
    %60 = vector.broadcast %59 : vector<8x1xf32> to vector<8x128xf32>
    %61 = arith.mulf %51, %60 : vector<8x128xf32>
    %c1_26 = arith.constant 1 : index
    %c0_27 = arith.constant 0 : index
    %c0_28 = arith.constant 0 : index
    %62 = vector.load %arg4[%c1_26, %c0_27, %c0_28] : memref<2x128x128xbf16, #tpu.memory_space<vmem>>, vector<1x128x128xbf16>
    %63 = vector.shape_cast %62 : vector<1x128x128xbf16> to vector<128x128xbf16>
    %c2 = arith.constant 2 : index
    %c0_29 = arith.constant 0 : index
    %64 = vector.load %arg5[%c2, %c0_29] : memref<3x128xf32, #tpu.memory_space<vmem>>, vector<1x128xf32>
    %65 = arith.truncf %61 : vector<8x128xf32> to vector<8x128xbf16>
    %cst_30 = arith.constant dense<0.000000e+00> : vector<8x128xf32>
    %66 = tpu.matmul %65, %63, %cst_30 {dimension_numbers = #tpu.dot_dimension_numbers<[1], [0], [0], [1], [0, 0, 1, 1], [], []>} : vector<8x128xbf16>, vector<128x128xbf16>, vector<8x128xf32> -> vector<8x128xf32>
    %67 = vector.broadcast %64 : vector<1x128xf32> to vector<8x128xf32>
    %68 = arith.addf %66, %67 : vector<8x128xf32>
    %cst_31 = arith.constant 5.000000e-01 : f32
    %69 = vector.broadcast %cst_31 : f32 to vector<8x128xf32>
    %70 = arith.mulf %69, %68 : vector<8x128xf32>
    %cst_32 = arith.constant 0.707106769 : f32
    %71 = vector.broadcast %cst_32 : f32 to vector<8x128xf32>
    %72 = arith.mulf %68, %71 : vector<8x128xf32>
    %73 = math.erf %72 : vector<8x128xf32>
    %cst_33 = arith.constant 1.000000e+00 : f32
    %74 = vector.broadcast %cst_33 : f32 to vector<8x128xf32>
    %75 = arith.addf %74, %73 : vector<8x128xf32>
    %76 = arith.mulf %70, %75 : vector<8x128xf32>
    %cst_34 = arith.constant dense<0.000000e+00> : vector<8xf32>
    %77 = vector.multi_reduction <add>, %76, %cst_34 [1] : vector<8x128xf32> to vector<8xf32>
    %78 = vector.shape_cast %77 : vector<8xf32> to vector<8x1xf32>
    %cst_35 = arith.constant 1.280000e+02 : f32
    %79 = vector.broadcast %cst_35 : f32 to vector<8x1xf32>
    %80 = arith.divf %78, %79 : vector<8x1xf32>
    %81 = vector.broadcast %80 : vector<8x1xf32> to vector<8x128xf32>
    %82 = arith.subf %76, %81 : vector<8x128xf32>
    %83 = arith.mulf %82, %82 : vector<8x128xf32>
    %cst_36 = arith.constant dense<0.000000e+00> : vector<8xf32>
    %84 = vector.multi_reduction <add>, %83, %cst_36 [1] : vector<8x128xf32> to vector<8xf32>
    %85 = vector.shape_cast %84 : vector<8xf32> to vector<8x1xf32>
    %cst_37 = arith.constant 1.280000e+02 : f32
    %86 = vector.broadcast %cst_37 : f32 to vector<8x1xf32>
    %87 = arith.divf %85, %86 : vector<8x1xf32>
    %cst_38 = arith.constant 9.99999974E-6 : f32
    %88 = vector.broadcast %cst_38 : f32 to vector<8x1xf32>
    %89 = arith.addf %87, %88 : vector<8x1xf32>
    %90 = math.rsqrt %89 : vector<8x1xf32>
    %91 = vector.broadcast %90 : vector<8x1xf32> to vector<8x128xf32>
    %92 = arith.mulf %82, %91 : vector<8x128xf32>
    %c0_39 = arith.constant 0 : index
    %c0_40 = arith.constant 0 : index
    %93 = vector.load %arg7[%c0_39, %c0_40] : memref<3x24xf32, #tpu.memory_space<vmem>>, vector<1x24xf32>
    %c1_41 = arith.constant 1 : index
    %c0_42 = arith.constant 0 : index
    %94 = vector.load %arg7[%c1_41, %c0_42] : memref<3x24xf32, #tpu.memory_space<vmem>>, vector<1x24xf32>
    %c2_43 = arith.constant 2 : index
    %c0_44 = arith.constant 0 : index
    %95 = vector.load %arg7[%c2_43, %c0_44] : memref<3x24xf32, #tpu.memory_space<vmem>>, vector<1x24xf32>
    %96 = arith.truncf %92 : vector<8x128xf32> to vector<8x128xbf16>
    %c0_45 = arith.constant 0 : index
    %c0_46 = arith.constant 0 : index
    %97 = vector.load %arg6[%c0_45, %c0_46] : memref<128x24xbf16, #tpu.memory_space<vmem>>, vector<128x24xbf16>
    %cst_47 = arith.constant dense<0.000000e+00> : vector<8x24xf32>
    %98 = tpu.matmul %96, %97, %cst_47 {dimension_numbers = #tpu.dot_dimension_numbers<[1], [0], [0], [1], [0, 0, 1, 1], [], []>} : vector<8x128xbf16>, vector<128x24xbf16>, vector<8x24xf32> -> vector<8x24xf32>
    %99 = vector.broadcast %93 : vector<1x24xf32> to vector<8x24xf32>
    %100 = arith.addf %98, %99 : vector<8x24xf32>
    %cst_48 = arith.constant dense<0.000000e+00> : vector<8xf32>
    %101 = vector.multi_reduction <add>, %100, %cst_48 [1] : vector<8x24xf32> to vector<8xf32>
    %102 = vector.shape_cast %101 : vector<8xf32> to vector<8x1xf32>
    %cst_49 = arith.constant 2.400000e+01 : f32
    %103 = vector.broadcast %cst_49 : f32 to vector<8x1xf32>
    %104 = arith.divf %102, %103 : vector<8x1xf32>
    %105 = vector.broadcast %104 : vector<8x1xf32> to vector<8x24xf32>
    %106 = arith.subf %100, %105 : vector<8x24xf32>
    %107 = arith.mulf %106, %106 : vector<8x24xf32>
    %cst_50 = arith.constant dense<0.000000e+00> : vector<8xf32>
    %108 = vector.multi_reduction <add>, %107, %cst_50 [1] : vector<8x24xf32> to vector<8xf32>
    %109 = vector.shape_cast %108 : vector<8xf32> to vector<8x1xf32>
    %cst_51 = arith.constant 2.400000e+01 : f32
    %110 = vector.broadcast %cst_51 : f32 to vector<8x1xf32>
    %111 = arith.divf %109, %110 : vector<8x1xf32>
    %cst_52 = arith.constant 9.99999974E-6 : f32
    %112 = vector.broadcast %cst_52 : f32 to vector<8x1xf32>
    %113 = arith.addf %111, %112 : vector<8x1xf32>
    %114 = math.rsqrt %113 : vector<8x1xf32>
    %115 = vector.broadcast %114 : vector<8x1xf32> to vector<8x24xf32>
    %116 = arith.mulf %106, %115 : vector<8x24xf32>
    %117 = vector.broadcast %94 : vector<1x24xf32> to vector<8x24xf32>
    %118 = arith.mulf %116, %117 : vector<8x24xf32>
    %119 = vector.broadcast %95 : vector<1x24xf32> to vector<8x24xf32>
    %120 = arith.addf %118, %119 : vector<8x24xf32>
    %121 = vector.extract_strided_slice %120 {offsets = [0, 0], sizes = [8, 8], strides = [1, 1]} : vector<8x24xf32> to vector<8x8xf32>
    %122 = vector.extract_strided_slice %120 {offsets = [0, 8], sizes = [8, 8], strides = [1, 1]} : vector<8x24xf32> to vector<8x8xf32>
    %123 = vector.extract_strided_slice %120 {offsets = [0, 16], sizes = [8, 8], strides = [1, 1]} : vector<8x24xf32> to vector<8x8xf32>
    %124 = arith.maximumf %121, %122 : vector<8x8xf32>
    %125 = arith.maximumf %124, %123 : vector<8x8xf32>
    %126 = arith.subf %121, %125 : vector<8x8xf32>
    %127 = math.exp %126 : vector<8x8xf32>
    %128 = arith.subf %122, %125 : vector<8x8xf32>
    %129 = math.exp %128 : vector<8x8xf32>
    %130 = arith.subf %123, %125 : vector<8x8xf32>
    %131 = math.exp %130 : vector<8x8xf32>
    %132 = arith.addf %127, %129 : vector<8x8xf32>
    %133 = arith.addf %132, %131 : vector<8x8xf32>
    %cst_53 = arith.constant 1.000000e+00 : f32
    %134 = vector.broadcast %cst_53 : f32 to vector<8x8xf32>
    %135 = arith.divf %134, %133 : vector<8x8xf32>
    %136 = arith.mulf %127, %135 : vector<8x8xf32>
    %137 = arith.mulf %129, %135 : vector<8x8xf32>
    %138 = arith.mulf %131, %135 : vector<8x8xf32>
    %c0_54 = arith.constant 0 : index
    %c0_55 = arith.constant 0 : index
    %139 = vector.load %arg2[%c0_54, %c0_55] : memref<8x8xf32, #tpu.memory_space<vmem>>, vector<8x8xf32>
    %140 = arith.cmpf oge, %139, %136 : vector<8x8xf32>
    %141 = arith.extui %140 : vector<8x8xi1> to vector<8x8xi32>
    %142 = arith.sitofp %141 : vector<8x8xi32> to vector<8x8xf32>
    %143 = arith.addf %136, %137 : vector<8x8xf32>
    %144 = arith.cmpf oge, %139, %143 : vector<8x8xf32>
    %145 = arith.extui %144 : vector<8x8xi1> to vector<8x8xi32>
    %146 = arith.sitofp %145 : vector<8x8xi32> to vector<8x8xf32>
    %147 = arith.addf %142, %146 : vector<8x8xf32>
    %cst_56 = arith.constant 1.000000e+00 : f32
    %148 = vector.broadcast %cst_56 : f32 to vector<8x8xf32>
    %149 = arith.subf %147, %148 : vector<8x8xf32>
    %150 = tpu.concatenate %136, %137, %138, %149 in 1 : vector<8x8xf32>, vector<8x8xf32>, vector<8x8xf32>, vector<8x8xf32> -> vector<8x32xf32>
    %c0_57 = arith.constant 0 : index
    %c0_58 = arith.constant 0 : index
    %151 = vector.load %arg8[%c0_57, %c0_58] : memref<8x32xf32, #tpu.memory_space<vmem>>, vector<8x32xf32>
    tpu.vector_store %arg8[%c0_57, %c0_58], %150 {strides = array<i32>} : memref<8x32xf32, #tpu.memory_space<vmem>>, vector<8x32xf32>,
    return
  }
  func.func @transform_0(%arg0: i32) -> (i32, i32) {
    %c0_i32 = arith.constant 0 : i32
    %c0_i32_0 = arith.constant 0 : i32
    return %arg0, %c0_i32 : i32, i32
  }
  func.func @transform_1(%arg0: i32) -> (i32, i32) {
    %c0_i32 = arith.constant 0 : i32
    %c0_i32_0 = arith.constant 0 : i32
    return %arg0, %c0_i32 : i32, i32
  }
  func.func @transform_2(%arg0: i32) -> (i32, i32) {
    %c0_i32 = arith.constant 0 : i32
    %c0_i32_0 = arith.constant 0 : i32
    %c0_i32_1 = arith.constant 0 : i32
    return %c0_i32, %c0_i32_0 : i32, i32
  }
  func.func @transform_3(%arg0: i32) -> (i32, i32, i32) {
    %c0_i32 = arith.constant 0 : i32
    %c0_i32_0 = arith.constant 0 : i32
    %c0_i32_1 = arith.constant 0 : i32
    %c0_i32_2 = arith.constant 0 : i32
    return %c0_i32, %c0_i32_0, %c0_i32_1 : i32, i32, i32
  }
  func.func @transform_4(%arg0: i32) -> (i32, i32) {
    %c0_i32 = arith.constant 0 : i32
    %c0_i32_0 = arith.constant 0 : i32
    %c0_i32_1 = arith.constant 0 : i32
    return %c0_i32, %c0_i32_0 : i32, i32
  }
  func.func @transform_5(%arg0: i32) -> (i32, i32) {
    %c0_i32 = arith.constant 0 : i32
    %c0_i32_0 = arith.constant 0 : i32
    %c0_i32_1 = arith.constant 0 : i32
    return %c0_i32, %c0_i32_0 : i32, i32
  }
  func.func @transform_6(%arg0: i32) -> (i32, i32) {
    %c0_i32 = arith.constant 0 : i32
    %c0_i32_0 = arith.constant 0 : i32
    %c0_i32_1 = arith.constant 0 : i32
    return %c0_i32, %c0_i32_0 : i32, i32
  }
  func.func @transform_7(%arg0: i32) -> (i32, i32) {
    %c0_i32 = arith.constant 0 : i32
    %c0_i32_0 = arith.constant 0 : i32
    return %arg0, %c0_i32 : i32, i32
  }
}

</mosaic_0001>

<bundles_post_ra>
// kernel: tpu_custom_call.1
= control target key start
LH: loop header
LB: loop body
LE: loop exit
PB: predicated region body
PF: predicated region fallthrough
CT: control target
= control target key end

     0   :  { %12 = vsyncpa [#allocation3], 0  ;;  %s1559_s0 = inlined_call_operand.vmem [shape: f32[32,32], index: 0, kind: input, shape index: {}]   ;;  %s1560_s1 = inlined_call_operand.vmem [shape: f32[32,8], index: 1, kind: input, shape index: {}]   ;;  %s1561_s2 = inlined_call_operand.vmem [shape: bf16[32,128], index: 2, kind: input, shape index: {}]   ;;  %s1562_s3 = inlined_call_operand.hbm [shape: bf16[2,128,128], index: 3, kind: input, shape index: {}]   ;;  %s1563_s4 = inlined_call_operand.vmem [shape: f32[3,128], index: 4, kind: input, shape index: {}]   ;;  %s1564_s5 = inlined_call_operand.vmem [shape: bf16[128,24], index: 5, kind: input, shape index: {}]   ;;  %s1565_s6 = inlined_call_operand.vmem [shape: f32[3,24], index: 6, kind: input, shape index: {}]   ;;  %s1566_s7 = inlined_call_operand.hbm [shape: f32[32,32], index: 7, kind: output, shape index: {}]  }
   0x1   :  { %13 = vsyncpa [#allocation4], 0 }
   0x2   :  { %15 = vsyncpa [#allocation4 + $0x1], 0  ;;  %s1346_s24 = smov 0   ;;  %s1348_s25 = smov 0  }
   0x3   :  { %s1350_s26 = smov 0   ;;  %s1352_s27 = smov 0  }
   0x4 LB: > { %s1367_s28 = sadd.s32 4294967295, %s1293_s27   ;;  %s949_s29 = sadd.s32 4294967294, %s1293_s27   ;;  %s1293_s27 = sphi %s1352_s27, %s1574_s27   ;;  %s1289_s26 = sphi %s1350_s26, %s1573_s26   ;;  %s1285_s25 = sphi %s1348_s25, %s1572_s25   ;;  %s1281_s24 = sphi %s1346_s24, %s1571_s24  }
   0x5   : > { %s1371_s30 = sadd.s32 1, %s1293_s27   ;;  %s185_s8 = sadd.s32 1, %s1289_s26 }
   0x6   : > { %s182_s9 = ssub.s32 %s1293_s27, %s1371_s30  ;;  %p195_p0 = scmp.ne.s32.totalorder %s1289_s26, %s1285_s25 }
   0x7   : > { %p183_p1 = scmp.eq.s32.totalorder %s182_s9, 0  ;;  %p196_p2 = scmp.eq.s32.totalorder %s1367_s28, 3 }
   0x8   : > { %p201_p3 = scmp.ne.s32.totalorder %s1285_s25, %s1281_s24  ;;  %p202_p4 = scmp.eq.s32.totalorder %s949_s29, 3 }
   0x9   : > { %s1382_s10 = scalar_select %p183_p1, %s1289_s26, %s185_s8  }
   0xa   : > { %p1384_p5 = por %p196_p2, %p195_p0  ;;  %p1388_p6 = por %p202_p4, %p201_p3 }
   0xb   : > { %p950_p7 = scmp.ge.s32.totalorder %s1293_s27, 1  ;;  %p209_p8 = scmp.lt.s32.totalorder %s1293_s27, 5 }
   0xc   : > { %s1568_s12 = scalar_select %p1388_p6, 1, 0 }
   0xd   : > { %p1110_p9 = scmp.eq.s32.totalorder %s1367_s28, 0  ;;  %p1395_p10 = pnand %p950_p7, %p209_p8 }
   0xe   : > { %s1295_s14 = smov [#allocation2]  }
   0xf   : > { %s224_s15 = sshll.u32 %s1295_s14, 4  ;;  %p1102_p11 = pneg %p1395_p10  ;;  %s225_s15 = int_to_ptr.vmem [resolvable:$true] %s224_s15 }
  0x10   : > { %s1214_s16 = scalar_lea.vmem %s225_s15, 2048  ;;  %p1222_p3 = scmp.lt.s32.totalorder %s225_s15, %s225_s15 }
  0x11   : > { %p1103_p12 = pnand %p1110_p9, %p1102_p11  ;;  %p1215_p0 = scmp.ne.s32.totalorder %s225_s15, %s1214_s16 }
  0x12   : > { %p1223_p4 = scmp.lt.s32.totalorder %s1214_s16, %s1214_s16 }
  0x13   : > { %p1205_p13 = pneg %p1103_p12 }
  0x14   : > { %p1224_p6 = por %p1223_p4, %p1222_p3 }
  0x15   : > { %p1217_p1 = pnand %p1215_p0, %p1205_p13 }
  0x17   : > { %p1218_p2 = pneg %p1217_p1 }
  0x19   : > { %p1225_p7 = pnand %p1224_p6, %p1218_p2 }
  0x1b   : > { %1228 = shalt.err (!%p1225_p7)
}
  0x1c   : > { %s1296_s17 = smov 64   ;;  %s1297_s18 = smov 4  }
  0x1d   : > { %1105 = dma.hbm_to_vmem [thread:$0]  (!%p1103_p12), %s1562_s3, 2048, %s225_s15, [#allocation3], %s1296_s17, %s1296_s17, %s1297_s18  }
  0x1e   : > { %263 = sbr.rel (%p1395_p10) target bundleno = 2862 (0xb2e), region = 48 }
  0x23   : > { %1272 = dma.done.wait (%p1110_p9), [#allocation3], 2048  }
  0x24   : > { %1274 = vsyncadd (%p1110_p9), [#allocation3], 4294965248  ;;  %p298_p8 = scmp.lt.s32.totalorder %s1367_s28, 3  ;;  %v1298_v0 = vmov 0.0   ;;  %vm1299_vm0 = vmmov 0   ;;  %v1155_v1 = vld [vmem:[%s1561_s2 + $0x8] sm:$0xff]  }
  0x25   : > { %1028 = vmatprep.subr.bf16.mxu0 %v1298_v0  ;;  %1032 = vmatprep.mubr.msk.bf16.mxu0 %vm1299_vm0, %v1298_v0  ;;  %v1156_v2 = vld [vmem:[%s1561_s2] sm:$0xff]   ;;  %vm330_vm1 = vcmask 261120   ;;  %v1157_v16 = vld [vmem:[#allocation2 + $0x38] sm:$0xff]   ;;  %v1158_v17 = vld [vmem:[#allocation2 + $0x30] sm:$0xff]   ;;  %vm756_vm2 = vcmask 195584   ;;  %s1300_s20 = smov 112  }
  0x26   : > { %s1417_s21 = scalar_select %p298_p8, %s1367_s28, 3  ;;  %1036 = vmatprep.subr.bf16.mxu1 %v1298_v0  ;;  %1052 = vmatprep.mubr.msk.bf16.mxu1 %vm1299_vm0, %v1298_v0  ;;  %v958_v5 = vld [vmem:[%s1563_s4] ss:$0 sm:$0xff]  ;;  %v1159_v18 = vld [vmem:[#allocation2 + $0x28] sm:$0xff]   ;;  %v1161_v24 = vld [vmem:[#allocation2 + $0x18] sm:$0xff]   ;;  %vm846_vm5 = vcmask 64512  }
  0x27   : > { %1029 = vmatpush3.bf16.msra.mxu0 %v1155_v1  ;;  %1037 = vmatpush3.bf16.msra.mxu1 %v1157_v16  ;;  %v1160_v23 = vld [vmem:[#allocation2 + $0x20] sm:$0xff]   ;;  %v1162_v25 = vld [vmem:[#allocation2 + $0x10] sm:$0xff]   ;;  %v1163_v26 = vld [vmem:[#allocation2 + $0x8] sm:$0xff]   ;;  %s1301_s23 = smov 120   ;;  %s1302_s29 = smov 8   ;;  %vm848_vm6 = vcmask 130048  }
  0x28   : > { %s956_s22 = sshll.u32 %s1417_s21, 3  ;;  %1030 = vmatprep.subr.bf16.mxu0 %v1298_v0  ;;  %1038 = vmatprep.subr.bf16.mxu1 %v1298_v0  ;;  %v1164_v27 = vld [vmem:[#allocation2] sm:$0xff]   ;;  %v1165_v45 = vld [vmem:[#allocation2 + $0x78] sm:$0xff]   ;;  %v1166_v46 = vld [vmem:[#allocation2 + $0x70] sm:$0xff]   ;;  %s1304_s15 = smov 24  }
  0x29   : > { %s301_s8 = scalar_lea.vmem %s1559_s0, %s956_s22  ;;  %v962_v34 = vld [vmem:[%s1563_s4 + $0x1] ss:$0 sm:$0xff]  ;;  %v1167_v47 = vld [vmem:[#allocation2 + $0x68] sm:$0xff]   ;;  %v1169_v53 = vld [vmem:[#allocation2 + $0x58] sm:$0xff]   ;;  %s305_s14 = scalar_lea.vmem %s1560_s1, %s956_s22 }
  0x2a   : > { %v307_v3 = vld [vmem:[%s301_s8] sm:$0xff]  ;;  %v1170_v54 = vld [vmem:[#allocation2 + $0x50] sm:$0xff]   ;;  %v1171_v55 = vld [vmem:[#allocation2 + $0x48] sm:$0xff]   ;;  %s1303_s8 = smov 16   ;;  %s295_s16 = sand.u32 1, %s1285_s25  }
  0x2b   : > { %v313_v4 = vpack.c.bf16 %v307_v3, %v307_v3  ;;  %1031 = vmatpush3.bf16.msra.mxu0 %v1156_v2  ;;  %1039 = vmatpush3.bf16.msra.mxu1 %v1158_v17  ;;  %v1168_v52 = vld [vmem:[#allocation2 + $0x60] sm:$0xff]   ;;  %s955_s21 = sshll.u32 %s295_s16, 3  ;;  %s995_s22 = sshll.u32 %s1367_s28, 7 }
  0x2c   : > { %1056 = vmatprep.subr.bf16.mxu0 %v1298_v0  ;;  %1040 = vmatprep.subr.bf16.mxu1 %v1298_v0  ;;  %v1172_v56 = vld [vmem:[#allocation2 + $0x40] sm:$0xff]   ;;  %s297_s17 = scalar_lea.vmem [#allocation5], %s955_s21  ;;  %s1305_s28 = smov [#allocation5]  }
  0x2d   : > { %v971_v63 = vld [vmem:[%s1563_s4 + $0x2] ss:$0 sm:$0xff]  ;;  %s866_s18 = sshll.u32 %s297_s17, 4  ;;  %s1233_s9 = sshll.u32 %s1305_s28, 4  ;;  %s867_s18 = int_to_ptr.vmem [resolvable:$true] %s866_s18  ;;  %s1234_s9 = int_to_ptr.vmem [resolvable:$false] %s1233_s9 }
  0x2e   : > { %1033 = vmatmul.mubr.msk.bf16.vlgmr.msra.gmra.mxu0 %vm330_vm1, %v313_v4  ;;  %s1235_s13 = scalar_lea.vmem %s1234_s9, 256  ;;  %p1236_p11 = scmp.lt.s32.totalorder %s867_s18, %s1234_s9 }
  0x2f   : > { %1072 = vmatprep.mubr.msk.bf16.mxu0 %vm1299_vm0, %v1298_v0  ;;  %1041 = vmatpush3.bf16.msra.mxu1 %v1159_v18  ;;  %v1176_v18 = vld [vmem:[%s1564_s5 + $0x20] sm:$0xff]  }
  0x30   : > { %1042 = vmatprep.subr.bf16.mxu1 %v1298_v0  ;;  %1057 = vmatpush3.bf16.msra.mxu0 %v1165_v45  ;;  %v989_v45 = vld [vmem:[%s1565_s6 + $0x1] ss:$0 sm:$0xff] }
  0x31   : > { %1058 = vmatprep.subr.bf16.mxu0 %v1298_v0 }
  0x33   : > { %1043 = vmatpush3.bf16.msra.mxu1 %v1160_v23 }
  0x34   : > { %1044 = vmatprep.subr.bf16.mxu1 %v1298_v0  ;;  %1059 = vmatpush3.bf16.msra.mxu0 %v1166_v46 }
  0x35   : > { %1060 = vmatprep.subr.bf16.mxu0 %v1298_v0 }
  0x37   : > { %1045 = vmatpush3.bf16.msra.mxu1 %v1161_v24 }
  0x38   : > { %1046 = vmatprep.subr.bf16.mxu1 %v1298_v0  ;;  %1061 = vmatpush3.bf16.msra.mxu0 %v1167_v47  ;;  %v990_v47 = vld [vmem:[%s1565_s6 + $0x2] ss:$0 sm:$0xff] }
  0x39   : > { %1062 = vmatprep.subr.bf16.mxu0 %v1298_v0 }
  0x3b   : > { %1047 = vmatpush3.bf16.msra.mxu1 %v1162_v25 }
  0x3c   : > { %1048 = vmatprep.subr.bf16.mxu1 %v1298_v0  ;;  %1063 = vmatpush3.bf16.msra.mxu0 %v1168_v52 }
  0x3d   : > { %1064 = vmatprep.subr.bf16.mxu0 %v1298_v0 }
  0x3f   : > { %1049 = vmatpush3.bf16.msra.mxu1 %v1163_v26 }
  0x40   : > { %1050 = vmatprep.subr.bf16.mxu1 %v1298_v0  ;;  %1065 = vmatpush3.bf16.msra.mxu0 %v1169_v53 }
  0x41   : > { %1066 = vmatprep.subr.bf16.mxu0 %v1298_v0 }
  0x43   : > { %1051 = vmatpush3.bf16.msra.mxu1 %v1164_v27 }
  0x44   : > { %1076 = vmatprep.subr.bf16.mxu1 %v1298_v0  ;;  %1067 = vmatpush3.bf16.msra.mxu0 %v1170_v54 }
  0x45   : > { %1068 = vmatprep.subr.bf16.mxu0 %v1298_v0 }
  0x48   : > { %1069 = vmatpush3.bf16.msra.mxu0 %v1171_v55 }
  0x49   : > { %1070 = vmatprep.subr.bf16.mxu0 %v1298_v0 }
  0x4c   : > { %1071 = vmatpush3.bf16.msra.mxu0 %v1172_v56 }
  0xee   : > { %v368_v6 = vpop.f32.mrf.mxu0 }
  0xef   : > { %v369_v7 = vadd.f32 %v958_v5, %v368_v6 }
  0xf0   : > { %v1034_v8 = vpop.f32.mrf.mxu0 }
  0xf1   : > { %v375_v9 = vmul.f32 0.70710677, %v369_v7  ;;  %v374_v13 = vmul.f32 0.5, %v369_v7 }
  0xf2   : > { %v371_v10 = vpop.f32.mrf.mxu0 }
  0xf3   : > { %1181 = verf.f32 %v375_v9 }
  0xf4   : > { %v1035_v11 = vpop.f32.mrf.mxu0 }
  0xf5   : > { %v1173_v11 = vld [vmem:[%s1564_s5 + $0x38] sm:$0xff]  }
 0x100   : > { %v1182_v12 = vpop.eup %1181 }
 0x101   : > { %v377_v14 = vadd.f32 1.0, %v1182_v12  ;;  %v1174_v12 = vld [vmem:[%s1564_s5 + $0x30] sm:$0xff]  }
 0x103   : > { %v378_v15 = vmul.f32 %v377_v14, %v374_v13  ;;  %v1175_v13 = vld [vmem:[%s1564_s5 + $0x28] sm:$0xff]  }
 0x105   : > { %379 = vadd.xlane.f32.xlu0 %v378_v15 }
 0x18e   : > { %v380_v19 = vpop.xlane.xlu0 %379 }
 0x18f   : > { %v382_v20 = vmul.f32 0.0078125, %v380_v19  ;;  %v1177_v19 = vld [vmem:[%s1564_s5 + $0x18] sm:$0xff]  }
 0x191   : > { %v383_v21 = vsub.f32 %v378_v15, %v382_v20  ;;  %v1178_v20 = vld [vmem:[%s1564_s5 + $0x10] sm:$0xff]  }
 0x193   : > { %v384_v22 = vmul.f32 %v383_v21, %v383_v21 }
 0x195   : > { %385 = vadd.xlane.f32.xlu0 %v384_v22  ;;  %v1180_v22 = vld [vmem:[%s1564_s5] sm:$0xff]  }
 0x21e   : > { %v386_v28 = vpop.xlane.xlu0 %385 }
 0x21f   : > { %v387_v29 = vmul.f32 0.0078125, %v386_v28 }
 0x221   : > { %v388_v30 = vadd.f32 1e-05, %v387_v29  ;;  %v980_v29 = vld [vmem:[%s1565_s6] ss:$0 sm:$0xff] }
 0x223   : > { %1183 = vrsqrt.f32 %v388_v30 }
 0x230   : > { %v1184_v31 = vpop.eup %1183 }
 0x231   : > { %v390_v32 = vmul.f32 %v1184_v31, %v383_v21  ;;  %v1179_v21 = vld [vmem:[%s1564_s5 + $0x8] sm:$0xff]  }
 0x233   : > { %v408_v33 = vpack.c.bf16 %v390_v32, %v390_v32 }
 0x235   : > { %1053 = vmatmul.mubr.bf16.vlgmr.msra.gmra.mxu1 %v408_v33 }
 0x236   : > { %1092 = vmatprep.mubr.msk.bf16.mxu1 %vm1299_vm0, %v1298_v0  ;;  %1077 = vmatpush3.bf16.msra.mxu1 %v1173_v11 }
 0x237   : > { %1078 = vmatprep.subr.bf16.mxu1 %v1298_v0 }
 0x23a   : > { %1079 = vmatpush3.bf16.msra.mxu1 %v1174_v12 }
 0x23b   : > { %1080 = vmatprep.subr.bf16.mxu1 %v1298_v0 }
 0x23e   : > { %1081 = vmatpush3.bf16.msra.mxu1 %v1175_v13 }
 0x23f   : > { %1082 = vmatprep.subr.bf16.mxu1 %v1298_v0 }
 0x242   : > { %1083 = vmatpush3.bf16.msra.mxu1 %v1176_v18 }
 0x243   : > { %1084 = vmatprep.subr.bf16.mxu1 %v1298_v0 }
 0x246   : > { %1085 = vmatpush3.bf16.msra.mxu1 %v1177_v19 }
 0x247   : > { %1086 = vmatprep.subr.bf16.mxu1 %v1298_v0 }
 0x24a   : > { %1087 = vmatpush3.bf16.msra.mxu1 %v1178_v20 }
 0x24b   : > { %1088 = vmatprep.subr.bf16.mxu1 %v1298_v0 }
 0x24e   : > { %1089 = vmatpush3.bf16.msra.mxu1 %v1179_v21 }
 0x24f   : > { %1090 = vmatprep.subr.bf16.mxu1 %v1298_v0 }
 0x252   : > { %1091 = vmatpush3.bf16.msra.mxu1 %v1180_v22 }
 0x2f5   : > { %v495_v35 = vpop.f32.mrf.mxu1 }
 0x2f6   : > { %v496_v36 = vadd.f32 %v962_v34, %v495_v35 }
 0x2f7   : > { %v1054_v37 = vpop.f32.mrf.mxu1 }
 0x2f8   : > { %v502_v38 = vmul.f32 0.70710677, %v496_v36  ;;  %v501_v42 = vmul.f32 0.5, %v496_v36 }
 0x2f9   : > { %v498_v39 = vpop.f32.mrf.mxu1 }
 0x2fa   : > { %1185 = verf.f32 %v502_v38 }
 0x2fb   : > { %v1055_v40 = vpop.f32.mrf.mxu1 }
 0x307   : > { %v1186_v41 = vpop.eup %1185 }
 0x308   : > { %v504_v43 = vadd.f32 1.0, %v1186_v41 }
 0x30a   : > { %v505_v44 = vmul.f32 %v504_v43, %v501_v42 }
 0x30c   : > { %506 = vadd.xlane.f32.xlu1 %v505_v44 }
 0x395   : > { %v507_v48 = vpop.xlane.xlu1 %506 }
 0x396   : > { %v508_v49 = vmul.f32 0.0078125, %v507_v48 }
 0x398   : > { %v509_v50 = vsub.f32 %v505_v44, %v508_v49 }
 0x39a   : > { %v510_v51 = vmul.f32 %v509_v50, %v509_v50 }
 0x39c   : > { %511 = vadd.xlane.f32.xlu1 %v510_v51 }
 0x425   : > { %v512_v57 = vpop.xlane.xlu1 %511 }
 0x426   : > { %v513_v58 = vmul.f32 0.0078125, %v512_v57 }
 0x428   : > { %v514_v59 = vadd.f32 1e-05, %v513_v58 }
 0x42a   : > { %1187 = vrsqrt.f32 %v514_v59 }
 0x437   : > { %v1188_v60 = vpop.eup %1187 }
 0x438   : > { %v516_v61 = vmul.f32 %v1188_v60, %v509_v50 }
 0x43a   : > { %v535_v62 = vpack.c.bf16 %v516_v61, %v516_v61 }
 0x43c   : > { %1073 = vmatmul.mubr.bf16.vlgmr.msra.gmra.mxu0 %v535_v62 }
 0x4fc   : > { %v622_v1 = vpop.f32.mrf.mxu0 }
 0x4fd   : > { %v623_v2 = vadd.f32 %v971_v63, %v622_v1 }
 0x4fe   : > { %v1074_v3 = vpop.f32.mrf.mxu0 }
 0x4ff   : > { %v629_v4 = vmul.f32 0.70710677, %v623_v2  ;;  %v628_v8 = vmul.f32 0.5, %v623_v2 }
 0x500   : > { %v625_v5 = vpop.f32.mrf.mxu0 }
 0x501   : > { %1189 = verf.f32 %v629_v4 }
 0x502   : > { %v1075_v6 = vpop.f32.mrf.mxu0 }
 0x50e   : > { %v1190_v7 = vpop.eup %1189 }
 0x50f   : > { %v631_v9 = vadd.f32 1.0, %v1190_v7 }
 0x511   : > { %v632_v10 = vmul.f32 %v631_v9, %v628_v8 }
 0x513   : > { %633 = vadd.xlane.f32.xlu0 %v632_v10 }
 0x59c   : > { %v634_v14 = vpop.xlane.xlu0 %633 }
 0x59d   : > { %v635_v15 = vmul.f32 0.0078125, %v634_v14 }
 0x59f   : > { %v636_v16 = vsub.f32 %v632_v10, %v635_v15  ;;  %v828_v10 = vld [vmem:[%s305_s14] sm:$0xff] }
 0x5a1   : > { %v637_v17 = vmul.f32 %v636_v16, %v636_v16 }
 0x5a3   : > { %638 = vadd.xlane.f32.xlu1 %v637_v17 }
 0x62c   : > { %v639_v23 = vpop.xlane.xlu1 %638 }
 0x62d   : > { %v640_v24 = vmul.f32 0.0078125, %v639_v23 }
 0x62f   : > { %v641_v25 = vadd.f32 1e-05, %v640_v24 }
 0x631   : > { %1191 = vrsqrt.f32 %v641_v25 }
 0x63e   : > { %v1192_v26 = vpop.eup %1191 }
 0x63f   : > { %v643_v27 = vmul.f32 %v1192_v26, %v636_v16 }
 0x641   : > { %v647_v28 = vpack.c.bf16 %v643_v27, %v643_v27 }
 0x643   : > { %1093 = vmatmul.mubr.bf16.vlgmr.msra.gmra.mxu1 %v647_v28 }
 0x703   : > { %v750_v30 = vpop.f32.mrf.mxu1 }
 0x704   : > { %v751_v31 = vadd.f32 %v980_v29, %v750_v30 }
 0x705   : > { %v1094_v32 = vpop.f32.mrf.mxu1 }
 0x706   : > { %v757_v33 = vsel %vm756_vm2, %v751_v31, 0.0 }
 0x707   : > { %758 = vadd.xlane.f32.xlu0 %v757_v33  ;;  %v753_v34 = vpop.f32.mrf.mxu1 }
 0x709   : > { %v1095_v35 = vpop.f32.mrf.mxu1 }
 0x790   : > { %v759_v36 = vpop.xlane.xlu0 %758 }
 0x791   : > { %v761_v37 = vmul.f32 0.041666668, %v759_v36 }
 0x793   : > { %v762_v38 = vsub.f32 %v751_v31, %v761_v37 }
 0x795   : > { %v763_v39 = vmul.f32 %v762_v38, %v762_v38 }
 0x797   : > { %v764_v40 = vsel %vm756_vm2, %v763_v39, 0.0 }
 0x798   : > { %765 = vadd.xlane.f32.xlu1 %v764_v40 }
 0x821   : > { %v766_v41 = vpop.xlane.xlu1 %765 }
 0x822   : > { %v767_v42 = vmul.f32 0.041666668, %v766_v41 }
 0x824   : > { %v768_v43 = vadd.f32 1e-05, %v767_v42 }
 0x826   : > { %1193 = vrsqrt.f32 %v768_v43 }
 0x833   : > { %v1194_v44 = vpop.eup %1193 }
 0x834   : > { %v770_v46 = vmul.f32 %v1194_v44, %v762_v38 }
 0x836   : > { %v775_v48 = vmul.f32 %v989_v45, %v770_v46 }
 0x838   : > { %v780_v49 = vadd.f32 %v990_v47, %v775_v48 }
 0x83a   : > { %786 = vrot.lane.b32.xlu1 %v780_v49, %s1300_s20  ;;  %782 = vrot.lane.b32.xlu0 %v780_v49, %s1301_s23 }
 0x8ac   : > { %v783_v50 = vpop.permute.xlu0 %782  ;;  %v787_v52 = vpop.permute.xlu1 %786 }
 0x8ad   : > { %v785_v51 = vmax.f32 %v780_v49, %v783_v50 }
 0x8af   : > { %v789_v53 = vmax.f32 %v785_v51, %v787_v52 }
 0x8b1   : > { %794 = vrot.lane.b32.xlu1 %v789_v53, %s1302_s29  ;;  %v790_v62 = vsub.f32 %v780_v49, %v789_v53 }
 0x8b3   : > { %v791_v63 = vmul.f32 1.442695, %v790_v62 }
 0x8b5   : > { %800 = vrot.lane.b32.xlu1 %v789_v53, %s1303_s8 }
 0x923   : > { %v795_v54 = vpop.permute.xlu1 %794 }
 0x924   : > { %v797_v55 = vsub.f32 %v780_v49, %v795_v54 }
 0x926   : > { %v798_v56 = vmul.f32 1.442695, %v797_v55 }
 0x927   : > { %v801_v57 = vpop.permute.xlu1 %800 }
 0x928   : > { %1195 = vpow2.f32 %v798_v56  ;;  %v803_v58 = vsub.f32 %v780_v49, %v801_v57 }
 0x92a   : > { %v804_v59 = vmul.f32 1.442695, %v803_v58 }
 0x92c   : > { %1197 = vpow2.f32 %v804_v59 }
 0x92d   : > { %1199 = vpow2.f32 %v791_v63 }
 0x935   : > { %v1196_v60 = vpop.eup %1195 }
 0x936   : > { %807 = vrot.lane.b32.xlu0 %v1196_v60, %s1301_s23 }
 0x939   : > { %v1198_v61 = vpop.eup %1197 }
 0x93a   : > { %812 = vrot.lane.b32.xlu1 %v1198_v61, %s1300_s20  ;;  %v1200_v2 = vpop.eup %1199 }
 0x9a8   : > { %v808_v1 = vpop.permute.xlu0 %807 }
 0x9a9   : > { %v810_v3 = vadd.f32 %v1200_v2, %v808_v1 }
 0x9ac   : > { %v813_v4 = vpop.permute.xlu1 %812 }
 0x9ad   : > { %v815_v5 = vadd.f32 %v813_v4, %v810_v3 }
 0x9af   : > { %1201 = vrcp.f32 %v815_v5 }
 0x9bc   : > { %v1202_v6 = vpop.eup %1201 }
 0x9bd   : > { %820 = vrot.lane.b32.xlu0 %v1202_v6, %s1302_s29  ;;  %v818_v7 = vmul.f32 %v1202_v6, %v1200_v2  ;;  %s853_s29 = scalar_lea.sflag [#allocation4], %s295_s16 }
 0x9bf   : > { %vm829_vm3 = vcmp.ge.f32.partialorder %v828_v10, %v818_v7 }
 0x9c0   : > { %v991_v14 = vsel %vm829_vm3, 1.0, %v1298_v0 }
 0x9c1   : > { %824 = vrot.lane.b32.xlu0 %v1202_v6, %s1303_s8  ;;  %s1229_s8 = scalar_lea.vmem %s867_s18, 128 }
 0x9c2   : > { %p1230_p6 = scmp.ne.s32.totalorder %s867_s18, %s1229_s8  ;;  %p1237_p12 = scmp.lt.s32.totalorder %s1235_s13, %s1229_s8 }
 0x9c4   : > { %p1231_p9 = pnand %p1230_p6, %p1384_p5  ;;  %p1238_p13 = por %p1237_p12, %p1236_p11 }
 0x9c6   : > { %p1232_p10 = pneg %p1231_p9 }
 0x9c8   : > { %p1239_p0 = pnand %p1238_p13, %p1232_p10 }
 0xa2f   : > { %v821_v8 = vpop.permute.xlu0 %820 }
 0xa30   : > { %v823_v9 = vmul.f32 %v1196_v60, %v821_v8 }
 0xa32   : > { %833 = vrot.lane.b32.xlu1 %v823_v9, %s1301_s23  ;;  %v847_v19 = vsel %vm846_vm5, %v818_v7, %v823_v9  ;;  %s1522_s23 = scalar_lea.hbm %s1566_s7, %s995_s22 }
 0xa33   : > { %v825_v17 = vpop.permute.xlu0 %824 }
 0xa34   : > { %v827_v18 = vmul.f32 %v1198_v61, %v825_v17 }
 0xa36   : > { %v849_v20 = vsel %vm848_vm6, %v847_v19, %v827_v18 }
 0xaa4   : > { %v834_v11 = vpop.permute.xlu1 %833 }
 0xaa5   : > { %v836_v12 = vadd.f32 %v834_v11, %v818_v7 }
 0xaa7   : > { %vm837_vm4 = vcmp.ge.f32.partialorder %v828_v10, %v836_v12 }
 0xaa8   : > { %v992_v13 = vsel %vm837_vm4, 1.0, %v1298_v0 }
 0xaa9   : > { %v840_v15 = vadd.f32 %v992_v13, %v991_v14 }
 0xaab   : > { %v993_v16 = vadd.f32 -1.0, %v840_v15 }
 0xaad   : > { %843 = vrot.lane.b32.xlu1 %v993_v16, %s1304_s15 }
 0xb1f   : > { %v844_v21 = vpop.permute.xlu1 %843 }
 0xb20   : > { %v850_v0 = vsel %vm756_vm2, %v849_v20, %v844_v21 }
 0xb21   : > { %851 = vst.msk [vmem:[%s297_s17] sm:$0xff] %vm330_vm1, %v850_v0 }
 0xb22   : > { %1242 = shalt.err (!%p1239_p0)
}
 0xb23   : > { %s1243_s14 = scalar_lea.hbm %s1522_s23, 128  ;;  %s1247_s21 = scalar_lea.hbm %s1566_s7, 512 }
 0xb24   : > { %p1244_p1 = scmp.ne.s32.totalorder %s1522_s23, %s1243_s14  ;;  %p1248_p4 = scmp.lt.s32.totalorder %s1522_s23, %s1566_s7 }
 0xb25   : > { %p1249_p7 = scmp.lt.s32.totalorder %s1247_s21, %s1243_s14 }
 0xb26   : > { %p1245_p2 = pnand %p1244_p1, %p1384_p5 }
 0xb27   : > { %p1250_p8 = por %p1249_p7, %p1248_p4 }
 0xb28   : > { %p1246_p3 = pneg %p1245_p2 }
 0xb2a   : > { %p1251_p6 = pnand %p1250_p8, %p1246_p3 }
 0xb2c   : > { %1254 = shalt.err (!%p1251_p6)
}
 0xb2d   : > { %1100 = dma.vmem_to_hbm [thread:$0]  (%p1384_p5), %s867_s18, 128, %s1522_s23, %s853_s29  }
 0xb2e PF: > { %p1112_p9 = scmp.ge.s32.totalorder %s1293_s27, 2  ;;  %s878_s19 = sand.u32 1, %s1281_s24  }
 0xb2f   : > { %p1570_p10 = scmp.ne.s32.totalorder %s1568_s12, 0  ;;  %s879_s20 = scalar_lea.sflag [#allocation4], %s878_s19 }
 0xb31   : > { %p1107_p11 = pnand %p1112_p9, %p1570_p10 }
 0xb33   : > { %p1108_p12 = pneg %p1107_p11 }
 0xb35   : > { %1276 = dma.done.wait (%p1108_p12), %s879_s20, 128  }
 0xb36   : > { %1278 = vsyncadd (%p1108_p12), %s879_s20, 4294967168  ;;  %p18_p13 = scmp.ge.s32.totalorder %s1371_s30, 6   ;;  %s1571_s24 = smov %s1285_s25 }
 0xb37   : > { %s1572_s25 = smov %s1289_s26  ;;  %s1573_s26 = smov %s1382_s10 }
 0xb38   : > { %s1574_s27 = smov %s1371_s30  ;;  %20 = sbr.rel (!%p18_p13) target bundleno = 4 (0x4), region = 92 }
 0xb3d   :  { %884 = vsyncpa [#allocation3], 1 }
 0xb3e   :  { %886 = vsyncpa [#allocation3 + $0x1], 1 }
 0xb3f   :  { %887 = vsyncpa [#allocation4], 1 }
 0xb40   :  { %889 = vsyncpa [#allocation4 + $0x1], 1 }

</bundles_post_ra>
